<compile_context>
chip_gen: v6e
topology: v6e:2x2x1
jax: 0.10.0
libtpu: 0.0.40
codegen_flags: <defaults>
</compile_context>

<pallas_src>
import jax
import jax.numpy as jnp
from jax.experimental import pallas as pl
from jax.experimental.pallas import tpu as pltpu


_LANE_CANDIDATES = (1024, 512, 256, 128)   # lane-dense widths (multiples of 128)
_TARGET_BLOCK_BYTES = 8 << 20              # ~8 MiB blocks amortize the ~0.35us/step cost
_MEGACORE_SPLIT_BYTES = 2 << 20            # above this, split into >= 4 blocks (2 TCs on v7x)
_MIN_PALLAS_ELEMS = 1 << 16                # below this, a fused XLA multiply is faster


def _round_up(n, m):
    return ((n + m - 1) // m) * m


def _scale_kernel_smem(scale_ref, x_ref, o_ref):
    # scale_ref: (1,) f32 in SMEM; x_ref / o_ref: (tile_rows, lane_w) VMEM tiles.
    o_ref[...] = (x_ref[...].astype(jnp.float32) * scale_ref[0]).astype(o_ref.dtype)


def _make_const_scale_kernel(scale_const):
    scale_const = float(scale_const)

    def kernel(x_ref, o_ref):
        o_ref[...] = (x_ref[...].astype(jnp.float32) * scale_const).astype(o_ref.dtype)

    return kernel


def gaussian_denoiser(x: jax.Array, sigma, sigma_prior: float,
                      *, force_pallas: bool = False,
                      donate_x: bool = False) -> jax.Array:
    """JAX equivalent of GaussianDenoiser(sigma_prior).forward(x, sigma).

    Pallas path assumes a scalar sigma (python number or size-1 array); a
    per-sample sigma tensor falls back to a plain XLA broadcast multiply.
    """
    sigma_prior2 = float(sigma_prior) ** 2
    sigma_is_static = isinstance(sigma, (int, float))

    if not sigma_is_static:
        sigma_arr = jnp.asarray(sigma, jnp.float32)
        if sigma_arr.size != 1:
            # Per-sample sigma: scalar-only Pallas contract -> XLA broadcast path.
            scale = 1.0 / (1.0 + sigma_arr ** 2 / sigma_prior2)
            scale = scale.reshape(scale.shape + (1,) * (x.ndim - scale.ndim))
            return (x.astype(jnp.float32) * scale).astype(x.dtype)
        scale_arr = (1.0 / (1.0 + sigma_arr.reshape(()) ** 2 / sigma_prior2)
                     ).reshape(1).astype(jnp.float32)
        scale_val = None
    else:
        scale_val = 1.0 / (1.0 + float(sigma) ** 2 / sigma_prior2)
        scale_arr = None

    if x.size < _MIN_PALLAS_ELEMS and not force_pallas:
        # Tiny inputs: per-step + custom-call overhead dominates; plain XLA mul.
        s = scale_val if sigma_is_static else scale_arr[0]
        return (x.astype(jnp.float32) * s).astype(x.dtype)

    orig_shape = x.shape
    total = x.size
    itemsize = jnp.dtype(x.dtype).itemsize

    # --- Lane-dense 2D view; zero-copy whenever a 128-multiple divides total. ---
    lane_w = next((w for w in _LANE_CANDIDATES if total % w == 0), None)
    flat = x.reshape(-1)
    padded = False
    if lane_w is None:
        # Rare fallback: pad only the sub-row tail (< 1024 elements).
        lane_w = _LANE_CANDIDATES[0]
        padded_total = _round_up(total, lane_w)
        flat = jnp.pad(flat, (0, padded_total - total))
        padded = True
        rows = padded_total // lane_w
    else:
        rows = total // lane_w
    x2d = flat.reshape(rows, lane_w)

    # --- Tile sizing: byte budget (dtype-aware) + keep >= 4 blocks for megacore. ---
    row_bytes = lane_w * itemsize
    slab_bytes = rows * row_bytes
    budget_rows = max(8, (_TARGET_BLOCK_BYTES // row_bytes) // 8 * 8)
    if slab_bytes <= _MEGACORE_SPLIT_BYTES or rows <= 8:
        tile_rows = rows                              # single block == full array
    else:
        quarter = _round_up(pl.cdiv(rows, 4), 8)      # aim for >= 4 blocks
        tile_rows = min(budget_rows, quarter)         # multiple of 8 -> (8,128) rule OK
        if tile_rows >= rows:
            tile_rows = rows
    num_blocks = pl.cdiv(rows, tile_rows)             # partial trailing block is masked

    block_bytes = tile_rows * row_bytes
    # 2 double-buffered input blocks + 2 output blocks + headroom; floor above the
    # v5e/v6e/v7x scoped defaults, cap well under v7x's 64 MiB physical VMEM.
    vmem_limit = int(min(max(4 * block_bytes + (4 << 20), 32 << 20), 48 << 20))

    block_spec = pl.BlockSpec((tile_rows, lane_w), lambda i: (i, 0))
    cparams = pltpu.CompilerParams(
        dimension_semantics=("parallel",),            # shard row loop across v7x's 2 TCs
        vmem_limit_bytes=vmem_limit,
    )
    cost = pl.CostEstimate(flops=rows * lane_w, transcendentals=0,
                           bytes_accessed=2 * rows * lane_w * itemsize)

    if sigma_is_static:
        kernel = _make_const_scale_kernel(scale_val)
        in_specs = [block_spec]
        args = (x2d,)
        aliases = {0: 0} if donate_x else {}
    else:
        kernel = _scale_kernel_smem
        in_specs = [pl.BlockSpec(memory_space=pltpu.SMEM), block_spec]
        args = (scale_arr, x2d)
        aliases = {1: 0} if donate_x else {}

    out2d = pl.pallas_call(
        kernel,
        out_shape=jax.ShapeDtypeStruct(x2d.shape, x2d.dtype),
        grid=(num_blocks,),
        in_specs=in_specs,
        out_specs=block_spec,
        compiler_params=cparams,
        cost_estimate=cost,
        input_output_aliases=aliases,
    )(*args)

    out = out2d.reshape(-1)
    if padded:
        out = out[:total]
    return out.reshape(orig_shape)


if __name__ == "__main__":
    key = jax.random.PRNGKey(0)
    sigma_prior = 0.7   # module "parameter"
    sigma = 0.3         # noise level passed to forward
    ref_scale = 1.0 / (1.0 + sigma ** 2 / sigma_prior ** 2)

    # 1) Small shape matching the module's test usage; force the Pallas path
    #    (python-float sigma -> scale baked into the kernel as a constant).
    B, C, H, W = 2, 4, 16, 16
    x_small = jax.random.normal(key, (B, C, H, W), dtype=jnp.float32)
    out_small = jax.block_until_ready(
        gaussian_denoiser(x_small, sigma, sigma_prior, force_pallas=True))
    assert out_small.shape == x_small.shape and out_small.dtype == x_small.dtype
    assert jnp.max(jnp.abs(out_small - x_small * ref_scale)) < 1e-6

    # 2) Traced (array) sigma -> SMEM-scalar kernel path.
    out_traced = jax.block_until_ready(
        gaussian_denoiser(x_small, jnp.asarray(sigma, jnp.float32), sigma_prior,
                          force_pallas=True))
    assert jnp.max(jnp.abs(out_traced - x_small * ref_scale)) < 1e-6

    # 3) Larger batch: zero-copy (2048, 1024) view split into 4 blocks of
    #    ~2 MiB each (multi-block, double-buffered, megacore-parallel path).
    x_big = jax.random.normal(key, (2, 4, 512, 512), dtype=jnp.float32)
    out_big = jax.block_until_ready(gaussian_denoiser(x_big, sigma, sigma_prior))
    assert jnp.max(jnp.abs(out_big - x_big * ref_scale)) < 1e-6

    # 4) Total not a multiple of 128 (1x3x28x28): rare pad-the-tail fallback.
    x_odd = jax.random.normal(key, (1, 3, 28, 28), dtype=jnp.float32)
    out_odd = jax.block_until_ready(
        gaussian_denoiser(x_odd, sigma, sigma_prior, force_pallas=True))
    assert out_odd.shape == x_odd.shape
    assert jnp.max(jnp.abs(out_odd - x_odd * ref_scale)) < 1e-6

    print("KERNEL_OK")
</pallas_src>

<mosaic_0001>
module attributes {stable_mosaic.version = 11 : i64} {
  func.func @kernel(%arg0: i32, %arg1: memref<2x1024xf32, #tpu.memory_space<vmem>>, %arg2: memref<2x1024xf32, #tpu.memory_space<vmem>>) attributes {dimension_semantics = [#tpu.dimension_semantics<parallel>], iteration_bounds = array<i64: 1>, scalar_prefetch = 0 : i64, scratch_operands = 0 : i64, tpu.core_type = #tpu.core_type<tc>, window_params = [{transform_indices = @transform_0, window_bounds = array<i64: 2, 1024>}, {transform_indices = @transform_1, window_bounds = array<i64: 2, 1024>}]} {
    %c0 = arith.constant 0 : index
    %c0_0 = arith.constant 0 : index
    %0 = vector.load %arg1[%c0, %c0_0] : memref<2x1024xf32, #tpu.memory_space<vmem>>, vector<2x1024xf32>
    %cst = arith.constant 0.844827592 : f32
    %1 = vector.broadcast %cst : f32 to vector<2x1024xf32>
    %2 = arith.mulf %0, %1 : vector<2x1024xf32>
    %c0_1 = arith.constant 0 : index
    %c0_2 = arith.constant 0 : index
    %3 = vector.load %arg2[%c0_1, %c0_2] : memref<2x1024xf32, #tpu.memory_space<vmem>>, vector<2x1024xf32>
    tpu.vector_store %arg2[%c0_1, %c0_2], %2 {strides = array<i32>} : memref<2x1024xf32, #tpu.memory_space<vmem>>, vector<2x1024xf32>,
    return
  }
  func.func @transform_0(%arg0: i32) -> (i32, i32) {
    %c0_i32 = arith.constant 0 : i32
    %c0_i32_0 = arith.constant 0 : i32
    return %arg0, %c0_i32 : i32, i32
  }
  func.func @transform_1(%arg0: i32) -> (i32, i32) {
    %c0_i32 = arith.constant 0 : i32
    %c0_i32_0 = arith.constant 0 : i32
    return %arg0, %c0_i32 : i32, i32
  }
}

</mosaic_0001>

<bundles_post_ra>
// kernel: tpu_custom_call.1
= control target key start
LH: loop header
LB: loop body
LE: loop exit
PB: predicated region body
PF: predicated region fallthrough
CT: control target
= control target key end

     0   :  { %6 = vsyncpa [#allocation3], 0  ;;  %s106_s0 = inlined_call_operand.hbm [shape: f32[2,1024], index: 0, kind: input, shape index: {}]   ;;  %s107_s1 = inlined_call_operand.hbm [shape: f32[2,1024], index: 1, kind: output, shape index: {}]  }
   0x1   :  { %7 = vsyncpa [#allocation4], 0  ;;  %s88_s6 = smov [#allocation2]  }
   0x2   :  { %s14_s7 = sshll.u32 %s88_s6, 4  ;;  %s15_s7 = int_to_ptr.vmem [resolvable:$true] %s14_s7 }
   0x3   :  { %s52_s8 = scalar_lea.vmem %s15_s7, 256  ;;  %p57_p1 = scmp.lt.s32.totalorder %s15_s7, %s15_s7 }
   0x4   :  { %p53_p0 = scmp.ne.s32.totalorder %s15_s7, %s52_s8  ;;  %p58_p2 = scmp.lt.s32.totalorder %s52_s8, %s52_s8 }
   0x6   :  { %p59_p3 = por %p58_p2, %p57_p1 }
   0x8   :  { %p60_p4 = pnand %p59_p3, %p53_p0 }
   0xa   :  { %63 = shalt.err (!%p60_p4)
}
   0xb   :  { %17 = dma.hbm_to_vmem [thread:$0]  %s106_s0, 256, %s15_s7, [#allocation3]  }
   0xc   :  { %84 = dma.done.wait [#allocation3], 256  }
   0xd   :  { %85 = vsyncadd [#allocation3], 4294967040  ;;  %s89_s11 = smov [#allocation5]   ;;  %v21_v0 = vld [vmem:[#allocation2] sm:$0xff]  ;;  %v22_v1 = vld [vmem:[#allocation2 + $0x8] sm:$0xff] }
   0xe   :  { %s33_s12 = sshll.u32 %s89_s11, 4  ;;  %v23_v2 = vmul.f32 0.8448276, %v21_v0  ;;  %v24_v3 = vmul.f32 0.8448276, %v22_v1  ;;  %s34_s12 = int_to_ptr.vmem [resolvable:$true] %s33_s12 }
   0xf   :  { %s64_s13 = scalar_lea.vmem %s34_s12, 256  ;;  %p69_p6 = scmp.lt.s32.totalorder %s34_s12, %s34_s12 }
  0x10   :  { %25 = vst [vmem:[#allocation5] sm:$0xff] %v23_v2  ;;  %26 = vst [vmem:[#allocation5 + $0x8] sm:$0xff] %v24_v3  ;;  %p65_p5 = scmp.ne.s32.totalorder %s34_s12, %s64_s13  ;;  %p70_p7 = scmp.lt.s32.totalorder %s64_s13, %s64_s13 }
  0x12   :  { %p71_p8 = por %p70_p7, %p69_p6 }
  0x14   :  { %p72_p9 = pnand %p71_p8, %p65_p5 }
  0x16   :  { %75 = shalt.err (!%p72_p9)
}
  0x17   :  { %36 = dma.vmem_to_hbm [thread:$0]  %s34_s12, 256, %s107_s1, [#allocation4]  }
  0x18   :  { %86 = dma.done.wait [#allocation4], 256  }
  0x19   :  { %87 = vsyncadd [#allocation4], 4294967040 }
  0x1a   :  { %40 = vsyncpa [#allocation3], 1 }
  0x1b   :  { %41 = vsyncpa [#allocation4], 1 }

</bundles_post_ra>
